<compile_context>
chip_gen: v5e
topology: v5e:2x2
jax: 0.10.0
libtpu: 0.0.40
codegen_flags: <defaults>
</compile_context>

<pallas_src>
import functools

import jax
import jax.numpy as jnp
from jax.experimental import pallas as pl
from jax.experimental.pallas import tpu as pltpu


# ---------------------------------------------------------------------------
# Pallas kernels
# ---------------------------------------------------------------------------
def _conv_down_kernel(p_ref, w_ref, b_ref, o_ref, *, Wh):
    # p_ref: (1, 1, (Th+2)*Wh, 4C)  flattened super-pixel rows (with 2-row halo)
    # w_ref: (4, 4C, C)             one (4C x C) matrix per neighbouring super-pixel
    # b_ref: (1, C)
    # o_ref: (1, 1, Th*Wh, C)
    N = o_ref.shape[2]
    # The four neighbouring super-pixels of output position n live at the
    # contiguous row ranges n+0, n+1, n+Wh, n+Wh+1 of the flattened block.
    x00 = p_ref[0, 0, 0:N, :]
    x01 = p_ref[0, 0, 1:N + 1, :]
    x10 = p_ref[0, 0, Wh:Wh + N, :]
    x11 = p_ref[0, 0, Wh + 1:Wh + 1 + N, :]
    acc = jnp.dot(x00, w_ref[0], preferred_element_type=jnp.float32)
    acc = acc + jnp.dot(x01, w_ref[1], preferred_element_type=jnp.float32)
    acc = acc + jnp.dot(x10, w_ref[2], preferred_element_type=jnp.float32)
    acc = acc + jnp.dot(x11, w_ref[3], preferred_element_type=jnp.float32)
    acc = acc + b_ref[...].astype(jnp.float32)            # bias added once
    o_ref[0, 0] = acc.astype(o_ref.dtype)


def _avgpool_kernel(p_ref, o_ref):
    # p_ref: (4, S, C)   the four parity planes (2x2 window elements)
    # o_ref: (S, C)
    s = (p_ref[0] + p_ref[1]) + (p_ref[2] + p_ref[3])
    o_ref[...] = (s * 0.25).astype(o_ref.dtype)


# ---------------------------------------------------------------------------
# Wrappers
# ---------------------------------------------------------------------------
def _conv_row_tile(Wh, C, itemsize, Ho, target_bytes=2 * 1024 * 1024):
    # ~2 MiB input blocks -> comfortable double buffering even on v7x (64 MiB).
    per_row = 4 * C * Wh * itemsize
    th = int(target_bytes // max(per_row, 1)) - 2
    return max(1, min(Ho, th))


def _downsample_conv(x_nhwc, w, b):
    B, H, W, C = x_nhwc.shape
    Ho = (H - 1) // 2 + 1
    Wo = (W - 1) // 2 + 1
    Hh, Wh = Ho + 1, Wo + 1

    # conv padding = 1, plus (for odd sizes) one extra zero row/col so the
    # padded extent is exactly (2*Hh, 2*Wh); valid outputs never read it.
    xp = jnp.pad(x_nhwc, ((0, 0),
                          (1, 2 * Hh - H - 1),
                          (1, 2 * Wh - W - 1),
                          (0, 0)))

    # Super-pixel packing: sp[b, i, j, (2*ph+pw)*C + c] = xp[b, 2i+ph, 2j+pw, c]
    sp = xp.reshape(B, Hh, 2, Wh, 2, C).transpose(0, 1, 3, 2, 4, 5)
    sp = sp.reshape(B, Hh, Wh, 4 * C)

    # Row tiles with a 2-row halo (duplication (Th+2)/Th, i.e. a few %).
    itemsize = jnp.dtype(x_nhwc.dtype).itemsize
    Th = _conv_row_tile(Wh, C, itemsize, Ho)
    nT = pl.cdiv(Ho, Th)
    Ho_pad = nT * Th
    sp = jnp.pad(sp, ((0, 0), (0, Ho_pad + 2 - Hh), (0, 0), (0, 0)))
    tiles = jnp.stack([sp[:, t * Th:t * Th + Th + 2] for t in range(nT)],
                      axis=1)                              # (B, nT, Th+2, Wh, 4C)
    tiles = tiles.reshape(B, nT, (Th + 2) * Wh, 4 * C)

    # Weights: torch (Cout, Cin, 3, 3) -> 4 matrices (4*Cin, Cout), one per
    # neighbouring super-pixel (taps outside the 3x3 window are zero rows).
    wp = jnp.pad(w, ((0, 0), (0, 0), (0, 1), (0, 1)))      # (Cout, Cin, 4, 4)
    wq = wp.transpose(2, 3, 1, 0)                          # (kh, kw, Cin, Cout)
    wq = wq.reshape(2, 2, 2, 2, C, C).transpose(0, 2, 1, 3, 4, 5)
    wq = wq.reshape(4, 4 * C, C)                           # q = 2*di + dj
    b2 = b.reshape(1, C)

    N = Th * Wh
    out = pl.pallas_call(
        functools.partial(_conv_down_kernel, Wh=Wh),
        out_shape=jax.ShapeDtypeStruct((B, nT, N, C), x_nhwc.dtype),
        grid=(B, nT),
        in_specs=[
            pl.BlockSpec((1, 1, (Th + 2) * Wh, 4 * C),
                         lambda bb, t: (bb, t, 0, 0)),
            pl.BlockSpec((4, 4 * C, C), lambda bb, t: (0, 0, 0)),
            pl.BlockSpec((1, C), lambda bb, t: (0, 0)),
        ],
        out_specs=pl.BlockSpec((1, 1, N, C), lambda bb, t: (bb, t, 0, 0)),
        compiler_params=pltpu.CompilerParams(
            dimension_semantics=("parallel", "parallel"),
            vmem_limit_bytes=64 * 1024 * 1024),
    )(tiles, wq, b2)

    # Drop the junk column (j == Wo) and padded rows, back to (B, Ho, Wo, C).
    out = out.reshape(B, nT, Th, Wh, C)[:, :, :, :Wo, :]
    out = out.reshape(B, Ho_pad, Wo, C)[:, :Ho]
    return out


def _downsample_pool(x_nhwc, *, tile_rows=2048):
    B, H, W, C = x_nhwc.shape
    Ho, Wo = H // 2, W // 2
    x = x_nhwc[:, :2 * Ho, :2 * Wo, :]
    # Parity planes: par[2*di+dj, (b*Ho+i)*Wo+j, c] = x[b, 2i+di, 2j+dj, c]
    par = (x.reshape(B, Ho, 2, Wo, 2, C)
            .transpose(2, 4, 0, 1, 3, 5)
            .reshape(4, B * Ho * Wo, C))

    M = B * Ho * Wo
    S = tile_rows if M >= tile_rows else M                 # tile_rows % 8 == 0
    nS = pl.cdiv(M, S)
    Mp = nS * S
    if Mp > M:
        par = jnp.pad(par, ((0, 0), (0, Mp - M), (0, 0)))

    out = pl.pallas_call(
        _avgpool_kernel,
        out_shape=jax.ShapeDtypeStruct((Mp, C), x_nhwc.dtype),
        grid=(nS,),
        in_specs=[pl.BlockSpec((4, S, C), lambda i: (0, i, 0))],
        out_specs=pl.BlockSpec((S, C), lambda i: (i, 0)),
        compiler_params=pltpu.CompilerParams(
            dimension_semantics=("parallel",),
            vmem_limit_bytes=64 * 1024 * 1024),
    )(par)

    return out[:M].reshape(B, Ho, Wo, C)


def downsample(x_nchw, params, use_conv):
    x = jnp.transpose(x_nchw, (0, 2, 3, 1))                # NHWC: C on lanes
    if use_conv:
        out = _downsample_conv(x, params["w"], params["b"])
    else:
        out = _downsample_pool(x)
    return jnp.transpose(out, (0, 3, 1, 2))                # back to NCHW


# ---------------------------------------------------------------------------
# Pure-JAX references (correctness check)
# ---------------------------------------------------------------------------
def _conv_ref(x_nchw, w, b):
    out = jax.lax.conv_general_dilated(
        x_nchw, w, window_strides=(2, 2), padding=((1, 1), (1, 1)),
        dimension_numbers=("NCHW", "OIHW", "NCHW"))
    return out + b[None, :, None, None]


def _pool_ref(x_nchw):
    B, C, H, W = x_nchw.shape
    return x_nchw.reshape(B, C, H // 2, 2, W // 2, 2).mean(axis=(3, 5))


# ---------------------------------------------------------------------------
if __name__ == "__main__":
    key = jax.random.PRNGKey(0)
    kx, kw, kb = jax.random.split(key, 3)

    B, C, H, W = 2, 4, 16, 16
    x = jax.random.normal(kx, (B, C, H, W), dtype=jnp.float32)

    # Deterministic Conv2d(C, C, 3) params (torch-like uniform(-1/sqrt(fan_in)))
    fan_in = C * 3 * 3
    bound = 1.0 / (fan_in ** 0.5)
    params = {
        "w": jax.random.uniform(kw, (C, C, 3, 3), jnp.float32, -bound, bound),
        "b": jax.random.uniform(kb, (C,), jnp.float32, -bound, bound),
    }

    down_conv = jax.jit(lambda xx, pp: downsample(xx, pp, use_conv=True))
    down_pool = jax.jit(lambda xx, pp: downsample(xx, pp, use_conv=False))

    # use_conv = True path
    y_conv = jax.block_until_ready(down_conv(x, params))
    y_conv_ref = _conv_ref(x, params["w"], params["b"])
    assert y_conv.shape == (B, C, H // 2, W // 2)
    assert jnp.allclose(y_conv, y_conv_ref, atol=1e-5, rtol=1e-5)

    # use_conv = False path (AvgPool2d(2))
    y_pool = jax.block_until_ready(down_pool(x, params))
    y_pool_ref = _pool_ref(x)
    assert y_pool.shape == (B, C, H // 2, W // 2)
    assert jnp.allclose(y_pool, y_pool_ref, atol=1e-5, rtol=1e-5)

    print("KERNEL_OK")
</pallas_src>

<mosaic_0001>
module attributes {stable_mosaic.version = 11 : i64} {
  func.func @_conv_down_kernel(%arg0: i32, %arg1: i32, %arg2: memref<1x1x90x16xf32, #tpu.memory_space<vmem>>, %arg3: memref<4x16x4xf32, #tpu.memory_space<vmem>>, %arg4: memref<1x4xf32, #tpu.memory_space<vmem>>, %arg5: memref<1x1x72x4xf32, #tpu.memory_space<vmem>>) attributes {dimension_semantics = [#tpu.dimension_semantics<parallel>, #tpu.dimension_semantics<parallel>], iteration_bounds = array<i64: 2, 1>, scalar_prefetch = 0 : i64, scratch_operands = 0 : i64, tpu.core_type = #tpu.core_type<tc>, window_params = [{transform_indices = @transform_0, window_bounds = array<i64: 1, 1, 90, 16>}, {pipeline_mode = #tpu.pipeline_mode<synchronous>, transform_indices = @transform_1, window_bounds = array<i64: 4, 16, 4>}, {pipeline_mode = #tpu.pipeline_mode<synchronous>, transform_indices = @transform_2, window_bounds = array<i64: 1, 4>}, {transform_indices = @transform_3, window_bounds = array<i64: 1, 1, 72, 4>}]} {
    %c0 = arith.constant 0 : index
    %c0_0 = arith.constant 0 : index
    %c0_1 = arith.constant 0 : index
    %c0_2 = arith.constant 0 : index
    %0 = vector.load %arg2[%c0, %c0_0, %c0_1, %c0_2] : memref<1x1x90x16xf32, #tpu.memory_space<vmem>>, vector<1x1x72x16xf32>
    %1 = vector.shape_cast %0 : vector<1x1x72x16xf32> to vector<72x16xf32>
    %c0_3 = arith.constant 0 : index
    %c0_4 = arith.constant 0 : index
    %c1 = arith.constant 1 : index
    %c0_5 = arith.constant 0 : index
    %2 = vector.load %arg2[%c0_3, %c0_4, %c1, %c0_5] : memref<1x1x90x16xf32, #tpu.memory_space<vmem>>, vector<1x1x72x16xf32>
    %3 = vector.shape_cast %2 : vector<1x1x72x16xf32> to vector<72x16xf32>
    %c0_6 = arith.constant 0 : index
    %c0_7 = arith.constant 0 : index
    %c9 = arith.constant 9 : index
    %c0_8 = arith.constant 0 : index
    %4 = vector.load %arg2[%c0_6, %c0_7, %c9, %c0_8] : memref<1x1x90x16xf32, #tpu.memory_space<vmem>>, vector<1x1x72x16xf32>
    %5 = vector.shape_cast %4 : vector<1x1x72x16xf32> to vector<72x16xf32>
    %c0_9 = arith.constant 0 : index
    %c0_10 = arith.constant 0 : index
    %c10 = arith.constant 10 : index
    %c0_11 = arith.constant 0 : index
    %6 = vector.load %arg2[%c0_9, %c0_10, %c10, %c0_11] : memref<1x1x90x16xf32, #tpu.memory_space<vmem>>, vector<1x1x72x16xf32>
    %7 = vector.shape_cast %6 : vector<1x1x72x16xf32> to vector<72x16xf32>
    %c0_12 = arith.constant 0 : index
    %c0_13 = arith.constant 0 : index
    %c0_14 = arith.constant 0 : index
    %8 = vector.load %arg3[%c0_12, %c0_13, %c0_14] : memref<4x16x4xf32, #tpu.memory_space<vmem>>, vector<1x16x4xf32>
    %9 = vector.shape_cast %8 : vector<1x16x4xf32> to vector<16x4xf32>
    %cst = arith.constant dense<0.000000e+00> : vector<72x4xf32>
    %10 = tpu.matmul %1, %9, %cst {dimension_numbers = #tpu.dot_dimension_numbers<[1], [0], [0], [1], [0, 0, 1, 1], [], []>} : vector<72x16xf32>, vector<16x4xf32>, vector<72x4xf32> -> vector<72x4xf32>
    %c1_15 = arith.constant 1 : index
    %c0_16 = arith.constant 0 : index
    %c0_17 = arith.constant 0 : index
    %11 = vector.load %arg3[%c1_15, %c0_16, %c0_17] : memref<4x16x4xf32, #tpu.memory_space<vmem>>, vector<1x16x4xf32>
    %12 = vector.shape_cast %11 : vector<1x16x4xf32> to vector<16x4xf32>
    %cst_18 = arith.constant dense<0.000000e+00> : vector<72x4xf32>
    %13 = tpu.matmul %3, %12, %cst_18 {dimension_numbers = #tpu.dot_dimension_numbers<[1], [0], [0], [1], [0, 0, 1, 1], [], []>} : vector<72x16xf32>, vector<16x4xf32>, vector<72x4xf32> -> vector<72x4xf32>
    %14 = arith.addf %10, %13 : vector<72x4xf32>
    %c2 = arith.constant 2 : index
    %c0_19 = arith.constant 0 : index
    %c0_20 = arith.constant 0 : index
    %15 = vector.load %arg3[%c2, %c0_19, %c0_20] : memref<4x16x4xf32, #tpu.memory_space<vmem>>, vector<1x16x4xf32>
    %16 = vector.shape_cast %15 : vector<1x16x4xf32> to vector<16x4xf32>
    %cst_21 = arith.constant dense<0.000000e+00> : vector<72x4xf32>
    %17 = tpu.matmul %5, %16, %cst_21 {dimension_numbers = #tpu.dot_dimension_numbers<[1], [0], [0], [1], [0, 0, 1, 1], [], []>} : vector<72x16xf32>, vector<16x4xf32>, vector<72x4xf32> -> vector<72x4xf32>
    %18 = arith.addf %14, %17 : vector<72x4xf32>
    %c3 = arith.constant 3 : index
    %c0_22 = arith.constant 0 : index
    %c0_23 = arith.constant 0 : index
    %19 = vector.load %arg3[%c3, %c0_22, %c0_23] : memref<4x16x4xf32, #tpu.memory_space<vmem>>, vector<1x16x4xf32>
    %20 = vector.shape_cast %19 : vector<1x16x4xf32> to vector<16x4xf32>
    %cst_24 = arith.constant dense<0.000000e+00> : vector<72x4xf32>
    %21 = tpu.matmul %7, %20, %cst_24 {dimension_numbers = #tpu.dot_dimension_numbers<[1], [0], [0], [1], [0, 0, 1, 1], [], []>} : vector<72x16xf32>, vector<16x4xf32>, vector<72x4xf32> -> vector<72x4xf32>
    %22 = arith.addf %18, %21 : vector<72x4xf32>
    %c0_25 = arith.constant 0 : index
    %c0_26 = arith.constant 0 : index
    %23 = vector.load %arg4[%c0_25, %c0_26] : memref<1x4xf32, #tpu.memory_space<vmem>>, vector<1x4xf32>
    %24 = vector.broadcast %23 : vector<1x4xf32> to vector<72x4xf32>
    %25 = arith.addf %22, %24 : vector<72x4xf32>
    %c0_27 = arith.constant 0 : index
    %c0_28 = arith.constant 0 : index
    %c0_29 = arith.constant 0 : index
    %c0_30 = arith.constant 0 : index
    %26 = vector.load %arg5[%c0_27, %c0_28, %c0_29, %c0_30] : memref<1x1x72x4xf32, #tpu.memory_space<vmem>>, vector<1x1x72x4xf32>
    %27 = vector.shape_cast %26 : vector<1x1x72x4xf32> to vector<72x4xf32>
    %28 = vector.shape_cast %25 : vector<72x4xf32> to vector<1x1x72x4xf32>
    tpu.vector_store %arg5[%c0_27, %c0_28, %c0_29, %c0_30], %28 {strides = array<i32>} : memref<1x1x72x4xf32, #tpu.memory_space<vmem>>, vector<1x1x72x4xf32>,
    return
  }
  func.func @transform_0(%arg0: i32, %arg1: i32) -> (i32, i32, i32, i32) {
    %c0_i32 = arith.constant 0 : i32
    %c0_i32_0 = arith.constant 0 : i32
    %c0_i32_1 = arith.constant 0 : i32
    return %arg0, %arg1, %c0_i32, %c0_i32_0 : i32, i32, i32, i32
  }
  func.func @transform_1(%arg0: i32, %arg1: i32) -> (i32, i32, i32) {
    %c0_i32 = arith.constant 0 : i32
    %c0_i32_0 = arith.constant 0 : i32
    %c0_i32_1 = arith.constant 0 : i32
    %c0_i32_2 = arith.constant 0 : i32
    return %c0_i32, %c0_i32_0, %c0_i32_1 : i32, i32, i32
  }
  func.func @transform_2(%arg0: i32, %arg1: i32) -> (i32, i32) {
    %c0_i32 = arith.constant 0 : i32
    %c0_i32_0 = arith.constant 0 : i32
    %c0_i32_1 = arith.constant 0 : i32
    return %c0_i32, %c0_i32_0 : i32, i32
  }
  func.func @transform_3(%arg0: i32, %arg1: i32) -> (i32, i32, i32, i32) {
    %c0_i32 = arith.constant 0 : i32
    %c0_i32_0 = arith.constant 0 : i32
    %c0_i32_1 = arith.constant 0 : i32
    return %arg0, %arg1, %c0_i32, %c0_i32_0 : i32, i32, i32, i32
  }
}

</mosaic_0001>

<bundles_post_ra>
// kernel: _lambda_.1
= control target key start
LH: loop header
LB: loop body
LE: loop exit
PB: predicated region body
PF: predicated region fallthrough
CT: control target
= control target key end

     0   :  { %s762_s12 = smov 0   ;;  %s764_s13 = smov 0   ;;  %s923_s0 = inlined_call_operand.vmem [shape: f32[2,1,90,16], index: 0, kind: input, shape index: {}]   ;;  %s924_s1 = inlined_call_operand.vmem [shape: f32[4,16,4], index: 1, kind: input, shape index: {}]   ;;  %s925_s2 = inlined_call_operand.vmem [shape: f32[1,4], index: 2, kind: input, shape index: {}]   ;;  %s926_s3 = inlined_call_operand.vmem [shape: f32[2,1,72,4], index: 3, kind: output, shape index: {}]  }
   0x1   :  { %s766_s14 = smov 0  }
   0x2 LB: > { %s25_s15 = sadd.s32 1, %s736_s13  ;;  %p644_p0 = scmp.ge.s32.totalorder %s740_s14, 1  ;;  %s740_s14 = sphi %s766_s14, %s13_s14   ;;  %s736_s13 = sphi %s764_s13, %s928_s13   ;;  %s732_s12 = sphi %s762_s12, %s927_s12  }
   0x3   : > { %p27_p1 = scmp.ge.s32.totalorder %s25_s15, 2  ;;  %p157_p2 = scmp.lt.s32.totalorder %s740_s14, 3 }
   0x5   : > { %s930_s15 = smov (%p27_p1, %s25_s15), 0  ;;  %p158_p3 = pnand %p644_p0, %p157_p2 }
   0x6   : > { %p189_p4 = scmp.lt.s32.totalorder (!%p158_p3), %s732_s12, 1 }
   0x7   : > { %161 = sbr.rel (%p158_p3) target bundleno = 220 (0xdc), region = 32 }
   0xc   : > { %v668_v0 = vld [vmem:[%s924_s1 + $0x28] sm:$0xff]  ;;  %v667_v1 = vld [vmem:[%s924_s1 + $0x20] sm:$0xff]  ;;  %v679_v2 = vld [vmem:[%s924_s1 + $0x38] sm:$0xff]  ;;  %s932_s12 = smov (!%p189_p4, %s732_s12), 1  ;;  %vm240_vm0 = vcmask 130048   ;;  %vm538_vm1 = vcmask 31744  }
   0xd   : > { %403 = vmatpush.msra.mxu2 %v668_v0  ;;  %486 = vmatpush.msra.mxu3 %v679_v2  ;;  %v648_v3 = vld [vmem:[%s924_s1 + $0x18] sm:$0xff]  ;;  %v236_v4 = vld [vmem:[%s924_s1 + $0x8] sm:$0xff]  ;;  %v678_v5 = vld [vmem:[%s924_s1 + $0x30] sm:$0xff]  ;;  %s691_s5 = smul.u32 96, %s932_s12 }
   0xe   : > { %282 = vmatpush.msra.mxu0 %v648_v3  ;;  %353 = vmatpush.msra.mxu1 %v236_v4  ;;  %v647_v6 = vld [vmem:[%s924_s1 + $0x10] sm:$0xff]  ;;  %v235_v7 = vld [vmem:[%s924_s1] sm:$0xff]  ;;  %s692_s9 = smul.u32 72, %s932_s12 }
   0xf   : > { %404 = vmatpush.msra.mxu2 %v667_v1  ;;  %487 = vmatpush.msra.mxu3 %v678_v5  ;;  %s810_s8 = scalar_lea.vmem %s923_s0, %s691_s5  ;;  %v880_v42 = vld [vmem:[%s925_s2] ss:$0 sm:$0xff] }
  0x10   : > { %283 = vmatpush.msra.mxu0 %v647_v6  ;;  %354 = vmatpush.msra.mxu1 %v235_v7  ;;  %v217_v8 = vld [vmem:[%s810_s8 + $0x9] sm:$0xff]  ;;  %v216_v10 = vld [vmem:[%s810_s8 + $0x1] sm:$0xff]  ;;  %v218_v12 = vld [vmem:[%s810_s8 + $0x11] sm:$0xff]  ;;  %s885_s18 = scalar_lea.vmem %s926_s3, %s692_s9 }
  0x11   : > { %v226_v9 = vld [vmem:[%s810_s8 + $0xa] sm:$0xff]  ;;  %669 = vmatmul.msk.f32.vlgmr.msra.gmra.mxu2 %vm240_vm0, %v217_v8  ;;  %v207_v11 = vld [vmem:[%s810_s8] sm:$0xff]  ;;  %649 = vmatmul.msk.f32.vlgmr.msra.gmra.mxu0 %vm240_vm0, %v216_v10  ;;  %v227_v13 = vld [vmem:[%s810_s8 + $0x12] sm:$0xff] }
  0x12   : > { %680 = vmatmul.msk.f32.vlgmr.msra.gmra.mxu3 %vm240_vm0, %v226_v9  ;;  %658 = vmatmul.msk.f32.vlgmr.msra.gmra.mxu1 %vm240_vm0, %v207_v11  ;;  %v208_v14 = vld [vmem:[%s810_s8 + $0x8] sm:$0xff]  ;;  %v219_v15 = vld [vmem:[%s810_s8 + $0x19] sm:$0xff]  ;;  %v209_v17 = vld [vmem:[%s810_s8 + $0x10] sm:$0xff] }
  0x13   : > { %v228_v16 = vld [vmem:[%s810_s8 + $0x1a] sm:$0xff]  ;;  %v229_v19 = vld [vmem:[%s810_s8 + $0x22] sm:$0xff]  ;;  %v230_v22 = vld [vmem:[%s810_s8 + $0x2a] sm:$0xff] }
  0x14   : > { %v220_v18 = vld [vmem:[%s810_s8 + $0x21] sm:$0xff]  ;;  %v210_v20 = vld [vmem:[%s810_s8 + $0x18] sm:$0xff]  ;;  %v221_v21 = vld [vmem:[%s810_s8 + $0x29] sm:$0xff] }
  0x15   : > { %v211_v23 = vld [vmem:[%s810_s8 + $0x20] sm:$0xff]  ;;  %v222_v24 = vld [vmem:[%s810_s8 + $0x31] sm:$0xff]  ;;  %v212_v26 = vld [vmem:[%s810_s8 + $0x28] sm:$0xff] }
  0x16   : > { %v231_v25 = vld [vmem:[%s810_s8 + $0x32] sm:$0xff]  ;;  %v232_v28 = vld [vmem:[%s810_s8 + $0x3a] sm:$0xff]  ;;  %v233_v31 = vld [vmem:[%s810_s8 + $0x42] sm:$0xff] }
  0x17   : > { %v223_v27 = vld [vmem:[%s810_s8 + $0x39] sm:$0xff]  ;;  %v213_v29 = vld [vmem:[%s810_s8 + $0x30] sm:$0xff]  ;;  %v224_v30 = vld [vmem:[%s810_s8 + $0x41] sm:$0xff] }
  0x18   : > { %v214_v32 = vld [vmem:[%s810_s8 + $0x38] sm:$0xff]  ;;  %v225_v33 = vld [vmem:[%s810_s8 + $0x49] sm:$0xff]  ;;  %v215_v35 = vld [vmem:[%s810_s8 + $0x40] sm:$0xff] }
  0x19   : > { %670 = vmatmul.msk.f32.gmra.mxu2 %vm240_vm0, %v218_v12  ;;  %650 = vmatmul.msk.f32.gmra.mxu0 %vm240_vm0, %v217_v8  ;;  %v234_v34 = vld [vmem:[%s810_s8 + $0x4a] sm:$0xff] }
  0x1a   : > { %681 = vmatmul.msk.f32.gmra.mxu3 %vm240_vm0, %v227_v13  ;;  %659 = vmatmul.msk.f32.gmra.mxu1 %vm240_vm0, %v208_v14 }
  0x21   : > { %671 = vmatmul.msk.f32.gmra.mxu2 %vm240_vm0, %v219_v15  ;;  %651 = vmatmul.msk.f32.gmra.mxu0 %vm240_vm0, %v218_v12 }
  0x22   : > { %682 = vmatmul.msk.f32.gmra.mxu3 %vm240_vm0, %v228_v16  ;;  %660 = vmatmul.msk.f32.gmra.mxu1 %vm240_vm0, %v209_v17 }
  0x29   : > { %672 = vmatmul.msk.f32.gmra.mxu2 %vm240_vm0, %v220_v18  ;;  %652 = vmatmul.msk.f32.gmra.mxu0 %vm240_vm0, %v219_v15 }
  0x2a   : > { %683 = vmatmul.msk.f32.gmra.mxu3 %vm240_vm0, %v229_v19  ;;  %661 = vmatmul.msk.f32.gmra.mxu1 %vm240_vm0, %v210_v20 }
  0x31   : > { %673 = vmatmul.msk.f32.gmra.mxu2 %vm240_vm0, %v221_v21  ;;  %653 = vmatmul.msk.f32.gmra.mxu0 %vm240_vm0, %v220_v18 }
  0x32   : > { %684 = vmatmul.msk.f32.gmra.mxu3 %vm240_vm0, %v230_v22  ;;  %662 = vmatmul.msk.f32.gmra.mxu1 %vm240_vm0, %v211_v23 }
  0x39   : > { %674 = vmatmul.msk.f32.gmra.mxu2 %vm240_vm0, %v222_v24  ;;  %654 = vmatmul.msk.f32.gmra.mxu0 %vm240_vm0, %v221_v21 }
  0x3a   : > { %685 = vmatmul.msk.f32.gmra.mxu3 %vm240_vm0, %v231_v25  ;;  %663 = vmatmul.msk.f32.gmra.mxu1 %vm240_vm0, %v212_v26 }
  0x41   : > { %675 = vmatmul.msk.f32.gmra.mxu2 %vm240_vm0, %v223_v27  ;;  %655 = vmatmul.msk.f32.gmra.mxu0 %vm240_vm0, %v222_v24 }
  0x42   : > { %686 = vmatmul.msk.f32.gmra.mxu3 %vm240_vm0, %v232_v28  ;;  %664 = vmatmul.msk.f32.gmra.mxu1 %vm240_vm0, %v213_v29 }
  0x49   : > { %676 = vmatmul.msk.f32.gmra.mxu2 %vm240_vm0, %v224_v30  ;;  %656 = vmatmul.msk.f32.gmra.mxu0 %vm240_vm0, %v223_v27 }
  0x4a   : > { %687 = vmatmul.msk.f32.gmra.mxu3 %vm240_vm0, %v233_v31  ;;  %665 = vmatmul.msk.f32.gmra.mxu1 %vm240_vm0, %v214_v32 }
  0x51   : > { %677 = vmatmul.msk.f32.gmra.mxu2 %vm240_vm0, %v225_v33  ;;  %657 = vmatmul.msk.f32.gmra.mxu0 %vm240_vm0, %v224_v30 }
  0x52   : > { %688 = vmatmul.msk.f32.gmra.mxu3 %vm240_vm0, %v234_v34  ;;  %666 = vmatmul.msk.f32.gmra.mxu1 %vm240_vm0, %v215_v35 }
  0x8e   : > { %v285_v36 = vpop.f32.mrf.mxu0 }
  0x8f   : > { %v356_v37 = vpop.f32.mrf.mxu1 }
  0x90   : > { %v357_v38 = vadd.f32 %v356_v37, %v285_v36 }
  0x94   : > { %v406_v39 = vpop.f32.mrf.mxu2 }
  0x95   : > { %v489_v40 = vpop.f32.mrf.mxu3  ;;  %v433_v41 = vadd.f32 %v406_v39, %v357_v38 }
  0x96   : > { %v288_v44 = vpop.f32.mrf.mxu0 }
  0x97   : > { %v516_v43 = vadd.f32 %v489_v40, %v433_v41  ;;  %v359_v45 = vpop.f32.mrf.mxu1 }
  0x98   : > { %v360_v47 = vadd.f32 %v359_v45, %v288_v44 }
  0x99   : > { %v529_v46 = vadd.f32 %v880_v42, %v516_v43 }
  0x9b   : > { %539 = vst.msk [vmem:[%s885_s18] sm:$0xff] %vm538_vm1, %v529_v46 }
  0x9c   : > { %v409_v48 = vpop.f32.mrf.mxu2 }
  0x9d   : > { %v492_v49 = vpop.f32.mrf.mxu3  ;;  %v434_v50 = vadd.f32 %v409_v48, %v360_v47 }
  0x9e   : > { %v291_v52 = vpop.f32.mrf.mxu0 }
  0x9f   : > { %v517_v51 = vadd.f32 %v492_v49, %v434_v50  ;;  %v362_v53 = vpop.f32.mrf.mxu1 }
  0xa0   : > { %v363_v55 = vadd.f32 %v362_v53, %v291_v52 }
  0xa1   : > { %v530_v54 = vadd.f32 %v880_v42, %v517_v51 }
  0xa3   : > { %540 = vst.msk [vmem:[%s885_s18 + $0x8] sm:$0xff] %vm538_vm1, %v530_v54 }
  0xa4   : > { %v412_v56 = vpop.f32.mrf.mxu2 }
  0xa5   : > { %v495_v57 = vpop.f32.mrf.mxu3  ;;  %v435_v58 = vadd.f32 %v412_v56, %v363_v55 }
  0xa6   : > { %v294_v60 = vpop.f32.mrf.mxu0 }
  0xa7   : > { %v518_v59 = vadd.f32 %v495_v57, %v435_v58  ;;  %v365_v61 = vpop.f32.mrf.mxu1 }
  0xa8   : > { %v366_v63 = vadd.f32 %v365_v61, %v294_v60 }
  0xa9   : > { %v531_v62 = vadd.f32 %v880_v42, %v518_v59 }
  0xab   : > { %541 = vst.msk [vmem:[%s885_s18 + $0x10] sm:$0xff] %vm538_vm1, %v531_v62 }
  0xac   : > { %v415_v0 = vpop.f32.mrf.mxu2 }
  0xad   : > { %v498_v1 = vpop.f32.mrf.mxu3  ;;  %v436_v2 = vadd.f32 %v415_v0, %v366_v63 }
  0xae   : > { %v297_v4 = vpop.f32.mrf.mxu0 }
  0xaf   : > { %v519_v3 = vadd.f32 %v498_v1, %v436_v2  ;;  %v368_v5 = vpop.f32.mrf.mxu1 }
  0xb0   : > { %v369_v7 = vadd.f32 %v368_v5, %v297_v4 }
  0xb1   : > { %v532_v6 = vadd.f32 %v880_v42, %v519_v3 }
  0xb3   : > { %542 = vst.msk [vmem:[%s885_s18 + $0x18] sm:$0xff] %vm538_vm1, %v532_v6 }
  0xb4   : > { %v418_v8 = vpop.f32.mrf.mxu2 }
  0xb5   : > { %v501_v9 = vpop.f32.mrf.mxu3  ;;  %v437_v10 = vadd.f32 %v418_v8, %v369_v7 }
  0xb6   : > { %v300_v12 = vpop.f32.mrf.mxu0 }
  0xb7   : > { %v520_v11 = vadd.f32 %v501_v9, %v437_v10  ;;  %v371_v13 = vpop.f32.mrf.mxu1 }
  0xb8   : > { %v372_v15 = vadd.f32 %v371_v13, %v300_v12 }
  0xb9   : > { %v533_v14 = vadd.f32 %v880_v42, %v520_v11 }
  0xbb   : > { %543 = vst.msk [vmem:[%s885_s18 + $0x20] sm:$0xff] %vm538_vm1, %v533_v14 }
  0xbc   : > { %v421_v16 = vpop.f32.mrf.mxu2 }
  0xbd   : > { %v504_v17 = vpop.f32.mrf.mxu3  ;;  %v438_v18 = vadd.f32 %v421_v16, %v372_v15 }
  0xbe   : > { %v303_v20 = vpop.f32.mrf.mxu0 }
  0xbf   : > { %v521_v19 = vadd.f32 %v504_v17, %v438_v18  ;;  %v374_v21 = vpop.f32.mrf.mxu1 }
  0xc0   : > { %v375_v23 = vadd.f32 %v374_v21, %v303_v20 }
  0xc1   : > { %v534_v22 = vadd.f32 %v880_v42, %v521_v19 }
  0xc3   : > { %544 = vst.msk [vmem:[%s885_s18 + $0x28] sm:$0xff] %vm538_vm1, %v534_v22 }
  0xc4   : > { %v424_v24 = vpop.f32.mrf.mxu2 }
  0xc5   : > { %v507_v25 = vpop.f32.mrf.mxu3  ;;  %v439_v26 = vadd.f32 %v424_v24, %v375_v23 }
  0xc6   : > { %v306_v28 = vpop.f32.mrf.mxu0 }
  0xc7   : > { %v522_v27 = vadd.f32 %v507_v25, %v439_v26  ;;  %v377_v29 = vpop.f32.mrf.mxu1 }
  0xc8   : > { %v378_v31 = vadd.f32 %v377_v29, %v306_v28 }
  0xc9   : > { %v535_v30 = vadd.f32 %v880_v42, %v522_v27 }
  0xcb   : > { %545 = vst.msk [vmem:[%s885_s18 + $0x30] sm:$0xff] %vm538_vm1, %v535_v30 }
  0xcc   : > { %v427_v32 = vpop.f32.mrf.mxu2 }
  0xcd   : > { %v510_v33 = vpop.f32.mrf.mxu3  ;;  %v440_v34 = vadd.f32 %v427_v32, %v378_v31 }
  0xce   : > { %v309_v36 = vpop.f32.mrf.mxu0 }
  0xcf   : > { %v523_v35 = vadd.f32 %v510_v33, %v440_v34  ;;  %v380_v37 = vpop.f32.mrf.mxu1 }
  0xd0   : > { %v381_v39 = vadd.f32 %v380_v37, %v309_v36 }
  0xd1   : > { %v536_v38 = vadd.f32 %v880_v42, %v523_v35 }
  0xd3   : > { %546 = vst.msk [vmem:[%s885_s18 + $0x38] sm:$0xff] %vm538_vm1, %v536_v38 }
  0xd4   : > { %v430_v40 = vpop.f32.mrf.mxu2 }
  0xd5   : > { %v513_v41 = vpop.f32.mrf.mxu3  ;;  %v441_v43 = vadd.f32 %v430_v40, %v381_v39 }
  0xd7   : > { %v524_v44 = vadd.f32 %v513_v41, %v441_v43 }
  0xd9   : > { %v537_v45 = vadd.f32 %v880_v42, %v524_v44 }
  0xdb   : > { %547 = vst.msk [vmem:[%s885_s18 + $0x40] sm:$0xff] %vm538_vm1, %v537_v45 }
  0xdc PF: > { %s13_s14 = sadd.s32 1, %s740_s14   ;;  %s927_s12 = smov %s736_s13 }
  0xdd   : > { %p10_p5 = scmp.ge.s32.totalorder %s13_s14, 4   ;;  %s928_s13 = smov %s930_s15 }
  0xdf   :  { %12 = sbr.rel (!%p10_p5) target bundleno = 2 (0x2), region = 65 }

</bundles_post_ra>
